<compile_context>
chip_gen: v6e
topology: v6e:2x2x1
jax: 0.10.0
libtpu: 0.0.40
codegen_flags: <defaults>
</compile_context>

<pallas_src>
import jax
import jax.numpy as jnp
from jax.experimental import pallas as pl
from jax.experimental.pallas import tpu as pltpu

OBS_DIM = 12
ACT_DIM = 4
IN_DIM = OBS_DIM + ACT_DIM   # 16
HIDDEN = 32                  # backbone hidden width
OUT_DIM = 32                 # backbone.output_dim

X_DIM = 2 * IN_DIM           # packed [means | vars] input width  (32)
H1_DIM = 2 * HIDDEN          # fused layer-1 output width         (64)
H2_DIM = 2 * OUT_DIM         # fused layer-2 output width         (64)

DEFAULT_BLOCK_ROWS = 4096    # batch tile; safe on v5e/v6e/v7x VMEM budgets


def _round_up(x, m):
    return ((x + m - 1) // m) * m


def mm_critic_kernel(x_ref, w1_ref, w2_ref, c_ref, out_ref):
    """x (tb, 32) -> out (tb, 2) = [q_mean | q_var].

    c_ref rows (each (1, 64)):
      0: [b1 | 0]        layer-1 bias (var path has no bias)
      1: [b2 | 0]        layer-2 bias
      2: [wl | 0]        last-layer mean weights (selects mean half)
      3: [0  | wl*wl]    last-layer var weights  (selects var half)
      4: [bl, 0, ...]    last-layer bias scalar in lane 0
    """
    f32 = jnp.float32

    # Backbone MMDetLayers 1 & 2: mean+var (and obs|act) fused via the
    # block-diagonal weights -> one MXU dot per layer instead of 2x2.
    h = jnp.dot(x_ref[...], w1_ref[...], preferred_element_type=f32) + c_ref[0:1, :]
    # TODO(synk): MMDetLayer source was not provided; the hidden-layer
    # activation moment matching (e.g. Gaussian ReLU closure) is omitted
    # (identity) rather than faked.  While it stays identity the whole affine
    # net could be pre-collapsed in the wrapper to a single (32,2) matmul;
    # kept layered so an activation can be slotted in right here.
    h = jnp.dot(h, w2_ref[...], preferred_element_type=f32) + c_ref[1:2, :]

    # Last MMDetLayer (isoutput=True): OUT_DIM -> 1 for mean and var paths.
    # VPU multiply + lane reduction (stays off the binding MXU-push slot);
    # the zero-padded weight rows pick out the mean/var halves.
    qm = jnp.sum(h * c_ref[2:3, :], axis=-1, keepdims=True) + c_ref[4:5, 0:1]
    qv = jnp.sum(h * c_ref[3:4, :], axis=-1, keepdims=True)

    # Single fused store of the (tb, 2) output block.
    out_ref[...] = jnp.concatenate([qm, qv], axis=-1)


def _block_diag(a, b):
    top = jnp.concatenate([a, jnp.zeros((a.shape[0], b.shape[1]), a.dtype)], axis=1)
    bot = jnp.concatenate([jnp.zeros((b.shape[0], a.shape[1]), b.dtype), b], axis=1)
    return jnp.concatenate([top, bot], axis=0)


def _pack_params(params):
    """Build the 3 VMEM-resident constant arrays from PyTorch-layout params."""
    w1, b1, w2, b2, wl, bl = [jnp.asarray(p, jnp.float32) for p in params]

    w1_big = _block_diag(jnp.transpose(w1), jnp.transpose(w1 * w1))   # (32, 64)
    w2_big = _block_diag(jnp.transpose(w2), jnp.transpose(w2 * w2))   # (64, 64)

    zH = jnp.zeros((1, HIDDEN), jnp.float32)
    zO = jnp.zeros((1, OUT_DIM), jnp.float32)
    consts = jnp.concatenate([
        jnp.concatenate([b1.reshape(1, HIDDEN), zH], axis=1),
        jnp.concatenate([b2.reshape(1, OUT_DIM), zO], axis=1),
        jnp.concatenate([wl.reshape(1, OUT_DIM), zO], axis=1),
        jnp.concatenate([zO, (wl * wl).reshape(1, OUT_DIM)], axis=1),
        jnp.concatenate([bl.reshape(1, 1),
                         jnp.zeros((1, H2_DIM - 1), jnp.float32)], axis=1),
    ], axis=0)                                                        # (5, 64)
    return w1_big, w2_big, consts


def mm_critic_forward(params, obs_mean, action_mean,
                      obs_var=None, action_var=None, *, block_rows=None):
    obs_mean = jnp.asarray(obs_mean, jnp.float32)
    action_mean = jnp.asarray(action_mean, jnp.float32)
    if obs_var is None:
        obs_var = jnp.zeros_like(obs_mean)
    if action_var is None:
        action_var = jnp.zeros_like(action_mean)
    obs_var = jnp.asarray(obs_var, jnp.float32)
    action_var = jnp.asarray(action_var, jnp.float32)

    B = obs_mean.shape[0]

    # ---- single packed activation stream: [obs_mean | act_mean | obs_var | act_var]
    x = jnp.concatenate([obs_mean, action_mean, obs_var, action_var], axis=-1)

    # ---- batch tiling ----------------------------------------------------------
    # sublane-aligned; capped at DEFAULT_BLOCK_ROWS (<=4096 fits every gen's VMEM
    # budget incl. v7x's 64 MiB); capped at ceil(B/2) so big batches give >=2
    # grid steps for v7x megacore sharding of the "parallel" batch axis.
    if block_rows is None:
        block_rows = DEFAULT_BLOCK_ROWS
    tb_cap = _round_up(max(int(block_rows), 8), 8)
    half = _round_up(max((B + 1) // 2, 1), 8)
    tb = max(8, min(tb_cap, half))
    b_pad = _round_up(max(B, 1), tb)
    grid = (b_pad // tb,)

    if b_pad != B:
        x = jnp.pad(x, ((0, b_pad - B), (0, 0)))

    # ---- packed, VMEM-resident parameters --------------------------------------
    w1_big, w2_big, consts = _pack_params(params)

    # ---- BlockSpecs -------------------------------------------------------------
    in_specs = [
        pl.BlockSpec((tb, X_DIM), lambda i: (i, 0)),            # packed activations
        pl.BlockSpec((X_DIM, H1_DIM), lambda i: (0, 0)),        # W1_big (resident)
        pl.BlockSpec((H1_DIM, H2_DIM), lambda i: (0, 0)),       # W2_big (resident)
        pl.BlockSpec((5, H2_DIM), lambda i: (0, 0)),            # consts (resident)
    ]
    out_spec = pl.BlockSpec((tb, 2), lambda i: (i, 0))

    # ---- advisory cost estimate -------------------------------------------------
    flops_per_row = 2 * (X_DIM * H1_DIM + H1_DIM * H2_DIM + 2 * H2_DIM)
    cost = pl.CostEstimate(
        flops=flops_per_row * b_pad,
        transcendentals=0,
        bytes_accessed=4 * (b_pad * X_DIM + b_pad * 2
                            + w1_big.size + w2_big.size + consts.size))

    out = pl.pallas_call(
        mm_critic_kernel,
        out_shape=jax.ShapeDtypeStruct((b_pad, 2), jnp.float32),
        grid=grid,
        in_specs=in_specs,
        out_specs=out_spec,
        compiler_params=pltpu.CompilerParams(
            dimension_semantics=("parallel",),
            vmem_limit_bytes=32 * 1024 * 1024),   # covers v5e's 16 MiB default
        cost_estimate=cost,
    )(x, w1_big, w2_big, consts)

    return out[:B, 0:1], out[:B, 1:2]


def init_params(key):
    """PyTorch nn.Linear-style init: U(-1/sqrt(fan_in), 1/sqrt(fan_in))."""
    def linear(key, dout, din):
        kw, kb = jax.random.split(key)
        bound = 1.0 / jnp.sqrt(jnp.float32(din))
        w = jax.random.uniform(kw, (dout, din), jnp.float32, -bound, bound)
        b = jax.random.uniform(kb, (1, dout), jnp.float32, -bound, bound)
        return w, b

    k1, k2, k3 = jax.random.split(key, 3)
    w1, b1 = linear(k1, HIDDEN, IN_DIM)
    w2, b2 = linear(k2, OUT_DIM, HIDDEN)
    wl, bl = linear(k3, 1, OUT_DIM)
    return (w1, b1, w2, b2, wl, bl)


def ref_forward(params, means, vars_):
    w1, b1, w2, b2, wl, bl = params
    m, v = means, vars_
    for w, b in ((w1, b1), (w2, b2), (wl, bl)):
        m, v = m @ w.T + b, v @ (w * w).T
    return m, v


if __name__ == "__main__":
    key = jax.random.PRNGKey(0)
    kp, ko, ka, kov, kav = jax.random.split(key, 5)

    params = init_params(kp)

    # ---- small case (B=2, explicit variances) ----
    B = 2
    obs_mean = jax.random.normal(ko, (B, OBS_DIM), jnp.float32)
    action_mean = jax.random.normal(ka, (B, ACT_DIM), jnp.float32)
    obs_var = jax.random.uniform(kov, (B, OBS_DIM), jnp.float32, 0.0, 1.0)
    action_var = jax.random.uniform(kav, (B, ACT_DIM), jnp.float32, 0.0, 1.0)

    q_mean, q_var = mm_critic_forward(params, obs_mean, action_mean,
                                      obs_var, action_var)
    q_mean, q_var = jax.block_until_ready((q_mean, q_var))

    means = jnp.concatenate([obs_mean, action_mean], axis=-1)
    vars_ = jnp.concatenate([obs_var, action_var], axis=-1)
    rm, rv = ref_forward(params, means, vars_)
    assert q_mean.shape == (B, 1) and q_var.shape == (B, 1)
    assert jnp.allclose(q_mean, rm, atol=1e-4, rtol=1e-4)
    assert jnp.allclose(q_var, rv, atol=1e-4, rtol=1e-4)

    # ---- multi-tile grid + batch padding + default (zero) variances ----
    B2 = 300
    k2o, k2a = jax.random.split(jax.random.PRNGKey(1))
    om2 = jax.random.normal(k2o, (B2, OBS_DIM), jnp.float32)
    am2 = jax.random.normal(k2a, (B2, ACT_DIM), jnp.float32)
    qm2, qv2 = mm_critic_forward(params, om2, am2, block_rows=128)
    qm2, qv2 = jax.block_until_ready((qm2, qv2))
    rm2, rv2 = ref_forward(params,
                           jnp.concatenate([om2, am2], axis=-1),
                           jnp.zeros((B2, IN_DIM), jnp.float32))
    assert qm2.shape == (B2, 1) and qv2.shape == (B2, 1)
    assert jnp.allclose(qm2, rm2, atol=1e-4, rtol=1e-4)
    assert jnp.allclose(qv2, rv2, atol=1e-5)

    # ---- default tile sizing (tb capped at ceil(B/2) -> 2-step grid) ----
    qm3, qv3 = mm_critic_forward(params, om2, am2)
    qm3, qv3 = jax.block_until_ready((qm3, qv3))
    assert jnp.allclose(qm3, rm2, atol=1e-4, rtol=1e-4)
    assert jnp.allclose(qv3, rv2, atol=1e-5)

    print("KERNEL_OK")
</pallas_src>

<mosaic_0001>
module attributes {stable_mosaic.version = 11 : i64} {
  func.func @mm_critic_kernel(%arg0: i32, %arg1: memref<8x32xf32, #tpu.memory_space<vmem>>, %arg2: memref<32x64xf32, #tpu.memory_space<vmem>>, %arg3: memref<64x64xf32, #tpu.memory_space<vmem>>, %arg4: memref<5x64xf32, #tpu.memory_space<vmem>>, %arg5: memref<8x2xf32, #tpu.memory_space<vmem>>) attributes {dimension_semantics = [#tpu.dimension_semantics<parallel>], iteration_bounds = array<i64: 1>, scalar_prefetch = 0 : i64, scratch_operands = 0 : i64, tpu.core_type = #tpu.core_type<tc>, window_params = [{transform_indices = @transform_0, window_bounds = array<i64: 8, 32>}, {pipeline_mode = #tpu.pipeline_mode<synchronous>, transform_indices = @transform_1, window_bounds = array<i64: 32, 64>}, {pipeline_mode = #tpu.pipeline_mode<synchronous>, transform_indices = @transform_2, window_bounds = array<i64: 64, 64>}, {pipeline_mode = #tpu.pipeline_mode<synchronous>, transform_indices = @transform_3, window_bounds = array<i64: 5, 64>}, {transform_indices = @transform_4, window_bounds = array<i64: 8, 2>}]} {
    %c0 = arith.constant 0 : index
    %c0_0 = arith.constant 0 : index
    %0 = vector.load %arg1[%c0, %c0_0] : memref<8x32xf32, #tpu.memory_space<vmem>>, vector<8x32xf32>
    %c0_1 = arith.constant 0 : index
    %c0_2 = arith.constant 0 : index
    %1 = vector.load %arg2[%c0_1, %c0_2] : memref<32x64xf32, #tpu.memory_space<vmem>>, vector<32x64xf32>
    %cst = arith.constant dense<0.000000e+00> : vector<8x64xf32>
    %2 = tpu.matmul %0, %1, %cst {dimension_numbers = #tpu.dot_dimension_numbers<[1], [0], [0], [1], [0, 0, 1, 1], [], []>} : vector<8x32xf32>, vector<32x64xf32>, vector<8x64xf32> -> vector<8x64xf32>
    %c0_3 = arith.constant 0 : index
    %c0_4 = arith.constant 0 : index
    %3 = vector.load %arg4[%c0_3, %c0_4] : memref<5x64xf32, #tpu.memory_space<vmem>>, vector<1x64xf32>
    %4 = vector.broadcast %3 : vector<1x64xf32> to vector<8x64xf32>
    %5 = arith.addf %2, %4 : vector<8x64xf32>
    %c0_5 = arith.constant 0 : index
    %c0_6 = arith.constant 0 : index
    %6 = vector.load %arg3[%c0_5, %c0_6] : memref<64x64xf32, #tpu.memory_space<vmem>>, vector<64x64xf32>
    %cst_7 = arith.constant dense<0.000000e+00> : vector<8x64xf32>
    %7 = tpu.matmul %5, %6, %cst_7 {dimension_numbers = #tpu.dot_dimension_numbers<[1], [0], [0], [1], [0, 0, 1, 1], [], []>} : vector<8x64xf32>, vector<64x64xf32>, vector<8x64xf32> -> vector<8x64xf32>
    %c1 = arith.constant 1 : index
    %c0_8 = arith.constant 0 : index
    %8 = vector.load %arg4[%c1, %c0_8] : memref<5x64xf32, #tpu.memory_space<vmem>>, vector<1x64xf32>
    %9 = vector.broadcast %8 : vector<1x64xf32> to vector<8x64xf32>
    %10 = arith.addf %7, %9 : vector<8x64xf32>
    %c2 = arith.constant 2 : index
    %c0_9 = arith.constant 0 : index
    %11 = vector.load %arg4[%c2, %c0_9] : memref<5x64xf32, #tpu.memory_space<vmem>>, vector<1x64xf32>
    %12 = vector.broadcast %11 : vector<1x64xf32> to vector<8x64xf32>
    %13 = arith.mulf %10, %12 : vector<8x64xf32>
    %cst_10 = arith.constant dense<0.000000e+00> : vector<8xf32>
    %14 = vector.multi_reduction <add>, %13, %cst_10 [1] : vector<8x64xf32> to vector<8xf32>
    %15 = vector.shape_cast %14 : vector<8xf32> to vector<8x1xf32>
    %c4 = arith.constant 4 : index
    %c0_11 = arith.constant 0 : index
    %16 = vector.load %arg4[%c4, %c0_11] : memref<5x64xf32, #tpu.memory_space<vmem>>, vector<1x1xf32>
    %17 = vector.broadcast %16 : vector<1x1xf32> to vector<8x1xf32>
    %18 = arith.addf %15, %17 : vector<8x1xf32>
    %c3 = arith.constant 3 : index
    %c0_12 = arith.constant 0 : index
    %19 = vector.load %arg4[%c3, %c0_12] : memref<5x64xf32, #tpu.memory_space<vmem>>, vector<1x64xf32>
    %20 = vector.broadcast %19 : vector<1x64xf32> to vector<8x64xf32>
    %21 = arith.mulf %10, %20 : vector<8x64xf32>
    %cst_13 = arith.constant dense<0.000000e+00> : vector<8xf32>
    %22 = vector.multi_reduction <add>, %21, %cst_13 [1] : vector<8x64xf32> to vector<8xf32>
    %23 = vector.shape_cast %22 : vector<8xf32> to vector<8x1xf32>
    %24 = tpu.concatenate %18, %23 in 1 : vector<8x1xf32>, vector<8x1xf32> -> vector<8x2xf32>
    %c0_14 = arith.constant 0 : index
    %c0_15 = arith.constant 0 : index
    %25 = vector.load %arg5[%c0_14, %c0_15] : memref<8x2xf32, #tpu.memory_space<vmem>>, vector<8x2xf32>
    tpu.vector_store %arg5[%c0_14, %c0_15], %24 {strides = array<i32>} : memref<8x2xf32, #tpu.memory_space<vmem>>, vector<8x2xf32>,
    return
  }
  func.func @transform_0(%arg0: i32) -> (i32, i32) {
    %c0_i32 = arith.constant 0 : i32
    %c0_i32_0 = arith.constant 0 : i32
    return %arg0, %c0_i32 : i32, i32
  }
  func.func @transform_1(%arg0: i32) -> (i32, i32) {
    %c0_i32 = arith.constant 0 : i32
    %c0_i32_0 = arith.constant 0 : i32
    %c0_i32_1 = arith.constant 0 : i32
    return %c0_i32, %c0_i32_0 : i32, i32
  }
  func.func @transform_2(%arg0: i32) -> (i32, i32) {
    %c0_i32 = arith.constant 0 : i32
    %c0_i32_0 = arith.constant 0 : i32
    %c0_i32_1 = arith.constant 0 : i32
    return %c0_i32, %c0_i32_0 : i32, i32
  }
  func.func @transform_3(%arg0: i32) -> (i32, i32) {
    %c0_i32 = arith.constant 0 : i32
    %c0_i32_0 = arith.constant 0 : i32
    %c0_i32_1 = arith.constant 0 : i32
    return %c0_i32, %c0_i32_0 : i32, i32
  }
  func.func @transform_4(%arg0: i32) -> (i32, i32) {
    %c0_i32 = arith.constant 0 : i32
    %c0_i32_0 = arith.constant 0 : i32
    return %arg0, %c0_i32 : i32, i32
  }
}

</mosaic_0001>

<bundles_post_ra>
// kernel: tpu_custom_call.1
= control target key start
LH: loop header
LB: loop body
LE: loop exit
PB: predicated region body
PF: predicated region fallthrough
CT: control target
= control target key end

     0   :  { %9 = vsyncpa [#allocation3], 0  ;;  %s467_s0 = inlined_call_operand.hbm [shape: f32[8,32], index: 0, kind: input, shape index: {}]   ;;  %s468_s1 = inlined_call_operand.hbm [shape: f32[32,64], index: 1, kind: input, shape index: {}]   ;;  %s469_s2 = inlined_call_operand.hbm [shape: f32[64,64], index: 2, kind: input, shape index: {}]   ;;  %s470_s3 = inlined_call_operand.hbm [shape: f32[5,64], index: 3, kind: input, shape index: {}]   ;;  %s471_s4 = inlined_call_operand.vmem [shape: f32[8,2], index: 4, kind: output, shape index: {}]  }
   0x1   :  { %10 = vsyncpa [#allocation5], 0 }
   0x2   :  { %11 = vsyncpa [#allocation8], 0  ;;  %s419_s15 = smov [#allocation4]  }
   0x3   :  { %s27_s16 = sshll.u32 %s419_s15, 4  ;;  %s28_s16 = int_to_ptr.vmem [resolvable:$true] %s27_s16 }
   0x4   :  { %s341_s17 = scalar_lea.vmem %s28_s16, 512  ;;  %p346_p1 = scmp.lt.s32.totalorder %s28_s16, %s28_s16 }
   0x5   :  { %p342_p0 = scmp.ne.s32.totalorder %s28_s16, %s341_s17  ;;  %p347_p2 = scmp.lt.s32.totalorder %s341_s17, %s341_s17 }
   0x7   :  { %p348_p3 = por %p347_p2, %p346_p1 }
   0x9   :  { %p349_p4 = pnand %p348_p3, %p342_p0 }
   0xb   :  { %352 = shalt.err (!%p349_p4)
}
   0xc   :  { %s420_s18 = smov 128   ;;  %s421_s19 = smov 8  }
   0xd   :  { %33 = dma.hbm_to_vmem [thread:$0]  %s468_s1, 512, %s28_s16, [#allocation5], %s420_s18, %s420_s18, %s421_s19  }
   0xe   :  { %s422_s22 = smov [#allocation2]   ;;  %s423_s24 = smov [#allocation6]  }
   0xf   :  { %s18_s23 = sshll.u32 %s422_s22, 4  ;;  %s39_s25 = sshll.u32 %s423_s24, 4  ;;  %s19_s23 = int_to_ptr.vmem [resolvable:$true] %s18_s23  ;;  %s40_s25 = int_to_ptr.vmem [resolvable:$true] %s39_s25 }
  0x10   :  { %s361_s26 = scalar_lea.vmem %s19_s23, 128  ;;  %p366_p6 = scmp.lt.s32.totalorder %s19_s23, %s19_s23 }
  0x11   :  { %p362_p5 = scmp.ne.s32.totalorder %s19_s23, %s361_s26  ;;  %p367_p7 = scmp.lt.s32.totalorder %s361_s26, %s361_s26 }
  0x13   :  { %p368_p8 = por %p367_p7, %p366_p6 }
  0x15   :  { %p369_p9 = pnand %p368_p8, %p362_p5 }
  0x17   :  { %372 = shalt.err (!%p369_p9)
}
  0x18   :  { %21 = dma.hbm_to_vmem [thread:$0]  %s467_s0, 128, %s19_s23, [#allocation3]  }
  0x19   :  { %s381_s29 = scalar_lea.vmem %s40_s25, 1024  ;;  %p386_p11 = scmp.lt.s32.totalorder %s40_s25, %s40_s25 }
  0x1a   :  { %p382_p10 = scmp.ne.s32.totalorder %s40_s25, %s381_s29  ;;  %p387_p12 = scmp.lt.s32.totalorder %s381_s29, %s381_s29 }
  0x1c   :  { %p388_p13 = por %p387_p12, %p386_p11 }
  0x1e   :  { %p389_p0 = pnand %p388_p13, %p382_p10 }
  0x20   :  { %392 = shalt.err (!%p389_p0)
}
  0x21   :  { %45 = dma.hbm_to_vmem [thread:$0]  %s469_s2, 1024, %s40_s25, [#allocation5], %s420_s18, %s420_s18, %s421_s19  }
  0x22   :  { %s424_s5 = smov [#allocation7]  }
  0x23   :  { %s52_s6 = sshll.u32 %s424_s5, 4  ;;  %s53_s6 = int_to_ptr.vmem [resolvable:$true] %s52_s6 }
  0x24   :  { %s401_s7 = scalar_lea.vmem %s53_s6, 128  ;;  %p406_p2 = scmp.lt.s32.totalorder %s53_s6, %s53_s6 }
  0x25   :  { %p402_p1 = scmp.ne.s32.totalorder %s53_s6, %s401_s7  ;;  %p407_p3 = scmp.lt.s32.totalorder %s401_s7, %s401_s7 }
  0x27   :  { %p408_p4 = por %p407_p3, %p406_p2 }
  0x29   :  { %p409_p5 = pnand %p408_p4, %p402_p1 }
  0x2b   :  { %412 = shalt.err (!%p409_p5)
}
  0x2c   :  { %55 = dma.hbm_to_vmem [thread:$0]  %s470_s3, 128, %s53_s6, [#allocation8]  }
  0x2d   :  { %413 = dma.done.wait [#allocation3], 128  }
  0x2e   :  { %414 = vsyncadd [#allocation3], 4294967168 }
  0x2f   :  { %415 = dma.done.wait [#allocation5], 1536  }
  0x30   :  { %416 = vsyncadd [#allocation5], 4294965760 }
  0x31   :  { %417 = dma.done.wait [#allocation8], 128  }
  0x32   :  { %418 = vsyncadd [#allocation8], 4294967168  ;;  %v425_v0 = vmov 0.0   ;;  %vm426_vm0 = vmmov 0   ;;  %v72_v1 = vld [vmem:[#allocation4 + $0x18] sm:$0xff]  ;;  %v71_v2 = vld [vmem:[#allocation4 + $0x10] sm:$0xff] }
  0x33   :  { %295 = vmatprep.subr.mxu0 %v425_v0  ;;  %303 = vmatprep.mubr.msk.f32.mxu0 %vm426_vm0, %v425_v0  ;;  %v159_v3 = vld [vmem:[#allocation6 + $0x38] sm:$0xff]  ;;  %v70_v4 = vld [vmem:[#allocation4 + $0x8] sm:$0xff]  ;;  %v158_v5 = vld [vmem:[#allocation6 + $0x30] sm:$0xff]  ;;  %vm78_vm1 = vcmask 261120   ;;  %vm165_vm2 = vcmask 523264   ;;  %vm263_vm3 = vcmask 7168  }
  0x34   :  { %306 = vmatprep.subr.mxu1 %v425_v0  ;;  %322 = vmatprep.mubr.msk.f32.mxu1 %vm426_vm0, %v425_v0  ;;  %v157_v6 = vld [vmem:[#allocation6 + $0x28] sm:$0xff]  ;;  %v69_v7 = vld [vmem:[#allocation4] sm:$0xff]  ;;  %v68_v8 = vld [vmem:[#allocation2] sm:$0xff]  ;;  %vm265_vm4 = vcmask 15360  }
  0x35   :  { %296 = vmatpush3.msra.mxu0 %v72_v1  ;;  %307 = vmatpush3.msra.mxu1 %v159_v3  ;;  %v156_v9 = vld [vmem:[#allocation6 + $0x20] sm:$0xff]  ;;  %v155_v10 = vld [vmem:[#allocation6 + $0x18] sm:$0xff]  ;;  %v154_v11 = vld [vmem:[#allocation6 + $0x10] sm:$0xff] }
  0x36   :  { %297 = vmatprep.subr.mxu0 %v425_v0  ;;  %308 = vmatprep.subr.mxu1 %v425_v0  ;;  %v153_v12 = vld [vmem:[#allocation6 + $0x8] sm:$0xff]  ;;  %v152_v13 = vld [vmem:[#allocation6] sm:$0xff] }
  0x37   :  { %298 = vmatpush3.msra.mxu0 %v71_v2  ;;  %309 = vmatpush3.msra.mxu1 %v158_v5  ;;  %v274_v14 = vld [vmem:[#allocation7] ss:$0 sm:$0xff]  ;;  %v276_v18 = vld [vmem:[#allocation7 + $0x1] ss:$0 sm:$0xff]  ;;  %v278_v20 = vld [vmem:[#allocation7 + $0x2] ss:$0 sm:$0xff] }
  0x38   :  { %299 = vmatprep.subr.mxu0 %v425_v0  ;;  %310 = vmatprep.subr.mxu1 %v425_v0  ;;  %v280_v23 = vld [vmem:[#allocation7 + $0x3] ss:$0 sm:$0xff]  ;;  %v279_v28 = vld [vmem:[#allocation7 + $0x4] ss:$0 sm:$0xff] }
  0x39   :  { %300 = vmatpush3.msra.mxu0 %v70_v4  ;;  %311 = vmatpush3.msra.mxu1 %v157_v6 }
  0x3a   :  { %301 = vmatprep.subr.mxu0 %v425_v0  ;;  %312 = vmatprep.subr.mxu1 %v425_v0 }
  0x3b   :  { %302 = vmatpush3.msra.mxu0 %v69_v7  ;;  %313 = vmatpush3.msra.mxu1 %v156_v9 }
  0x3c   :  { %304 = vmatmul.mubr.msk.f32.vlgmr.msra.gmra.mxu0 %vm78_vm1, %v68_v8  ;;  %314 = vmatprep.subr.mxu1 %v425_v0 }
  0x3d   :  { %315 = vmatpush3.msra.mxu1 %v155_v10 }
  0x3e   :  { %316 = vmatprep.subr.mxu1 %v425_v0 }
  0x3f   :  { %317 = vmatpush3.msra.mxu1 %v154_v11 }
  0x40   :  { %318 = vmatprep.subr.mxu1 %v425_v0 }
  0x41   :  { %319 = vmatpush3.msra.mxu1 %v153_v12 }
  0x42   :  { %320 = vmatprep.subr.mxu1 %v425_v0 }
  0x43   :  { %321 = vmatpush3.msra.mxu1 %v152_v13 }
  0xfc   :  { %v148_v15 = vpop.f32.mrf.mxu0 }
  0xfd   :  { %v149_v16 = vadd.f32 %v274_v14, %v148_v15 }
  0xfe   :  { %v305_v17 = vpop.f32.mrf.mxu0 }
  0xff   :  { %323 = vmatmul.mubr.msk.f32.vlgmr.msra.gmra.mxu1 %vm165_vm2, %v149_v16 }
 0x1bf   :  { %v235_v19 = vpop.f32.mrf.mxu1 }
 0x1c0   :  { %v236_v21 = vadd.f32 %v276_v18, %v235_v19 }
 0x1c1   :  { %v324_v22 = vpop.f32.mrf.mxu1 }
 0x1c2   :  { %v244_v24 = vmul.f32 %v278_v20, %v236_v21  ;;  %v259_v26 = vmul.f32 %v280_v23, %v236_v21 }
 0x1c4   :  { %v245_v25 = vsel %vm165_vm2, %v244_v24, 0.0  ;;  %v260_v27 = vsel %vm165_vm2, %v259_v26, 0.0 }
 0x1c5   :  { %246 = vadd.xlane.f32.xlu0 %v245_v25 }
 0x1c9   :  { %261 = vadd.xlane.f32.xlu0 %v260_v27 }
 0x24e   :  { %v247_v29 = vpop.xlane.xlu0 %246 }
 0x24f   :  { %v253_v30 = vadd.f32 %v279_v28, %v247_v29 }
 0x252   :  { %v262_v31 = vpop.xlane.xlu0 %261 }
 0x253   :  { %v264_v32 = vsel %vm263_vm3, %v253_v30, %v262_v31 }
 0x254   :  { %266 = vst.msk [vmem:[%s471_s4] sm:$0xff] %vm265_vm4, %v264_v32 }
 0x255   :  { %271 = vsyncpa [#allocation3], 1 }
 0x256   :  { %272 = vsyncpa [#allocation5], 1 }
 0x257   :  { %273 = vsyncpa [#allocation8], 1 }

</bundles_post_ra>
